<compile_context>
chip_gen: v5e
topology: v5e:2x2
jax: 0.10.0
libtpu: 0.0.40
codegen_flags: <defaults>
</compile_context>

<pallas_src>
import functools

import jax
import jax.numpy as jnp
from jax.experimental import pallas as pl
from jax.experimental.pallas import tpu as pltpu

_LANE = 128
_TILE_LADDER = (16, 64, 256, 512, 1024)


def _round_up(n, m):
    return (n + m - 1) // m * m


def _chip_config():
    """(epilogue dtype, #TensorCores) derived from the attached device."""
    try:
        kind = jax.devices()[0].device_kind.lower()
    except Exception:  # pragma: no cover - defensive default
        kind = ""
    has_bf16_valu = ("v6" in kind) or ("v7" in kind)
    num_tc = 2 if "v7" in kind else 1
    return (jnp.bfloat16 if has_bf16_valu else jnp.float32), num_tc


def _pick_batch_tile(batch, max_tile, num_tc):
    """Quantized batch tile: big enough to amortize per-step overhead, capped
    so a multi-TensorCore chip still gets >= 2 grid steps for large batches."""
    per_core = -(-batch // num_tc)                       # cdiv(batch, num_tc)
    target = min(_round_up(max(per_core, 1), 16), max(max_tile, 16))
    for t in _TILE_LADDER:
        if t >= target:
            return t
    return _TILE_LADDER[-1]


def _actor_kernel(ab_ref, x_ref, w1_ref, b1_ref, w2_ref, b2_ref, w3_ref,
                  b3_ref, o_ref, *, epi_dtype):
    """Fused state -> H1 -> H2 -> A MLP for one batch tile.

    MXU matmuls take bf16 operands and accumulate in f32; bias-add + relu
    epilogues run in `epi_dtype` (bf16 on v6e/v7x, f32 on v5e); tanh and the
    action_bound scale stay in f32.
    """
    ab = ab_ref[0]                                   # action_bound (SMEM, f32)
    zero = jnp.array(0, epi_dtype)

    # Cast activations to bf16 on the VPU (no wrapper-side pass over x).
    x = x_ref[...].astype(jnp.bfloat16)              # (TB, S)

    # fc1 + relu
    h1 = jnp.dot(x, w1_ref[...], preferred_element_type=jnp.float32)
    h1 = jnp.maximum(h1.astype(epi_dtype) + b1_ref[...].astype(epi_dtype), zero)

    # fc2 + relu
    h2 = jnp.dot(h1.astype(jnp.bfloat16), w2_ref[...],
                 preferred_element_type=jnp.float32)
    h2 = jnp.maximum(h2.astype(epi_dtype) + b2_ref[...].astype(epi_dtype), zero)

    # out + tanh, scaled by action_bound (f32 math; lane-dense 128-wide store)
    h3 = jnp.dot(h2.astype(jnp.bfloat16), w3_ref[...],
                 preferred_element_type=jnp.float32)
    h3 = jnp.tanh(h3 + b3_ref[...])
    o_ref[...] = (h3 * ab).astype(o_ref.dtype)


def pack_params(params):
    """Zero-pad hidden dims (400->512, 300->384) and action_dim (->128) to lane
    multiples, cast weights to bf16.  Zero padding keeps the forward exact:
    relu(0+0)=0 and tanh(0+0)*bound=0.  Biases stay f32 (kernel casts to the
    epilogue dtype, a 1-row op)."""
    w1, b1, w2, b2, w3, b3 = params
    s, h1 = w1.shape
    h2 = w2.shape[1]
    a = w3.shape[1]
    h1p = _round_up(h1, _LANE)       # 400 -> 512
    h2p = _round_up(h2, _LANE)       # 300 -> 384
    ap = _round_up(a, _LANE)         # 8   -> 128

    def pad(arr, shape):
        out = jnp.zeros(shape, arr.dtype)
        return out.at[tuple(slice(0, d) for d in arr.shape)].set(arr)

    return (
        pad(w1, (s, h1p)).astype(jnp.bfloat16),
        pad(b1, (1, h1p)).astype(jnp.float32),
        pad(w2, (h1p, h2p)).astype(jnp.bfloat16),
        pad(b2, (1, h2p)).astype(jnp.float32),
        pad(w3, (h2p, ap)).astype(jnp.bfloat16),
        pad(b3, (1, ap)).astype(jnp.float32),
    )


def actor_forward(x, packed_params, action_bound, action_dim, *,
                  max_batch_tile=1024):
    """x: (B, state_dim) f32 -> (B, action_dim) f32 actions in [-bound, bound]."""
    w1, b1, w2, b2, w3, b3 = packed_params
    B, S = x.shape
    H1p = w1.shape[1]
    H2p = w2.shape[1]
    Ap = w3.shape[1]

    epi_dtype, num_tc = _chip_config()
    tb = _pick_batch_tile(B, max_batch_tile, num_tc)
    grid = (pl.cdiv(B, tb),)          # ragged tail handled by Pallas masking

    ab = jnp.full((1,), action_bound, jnp.float32)

    full2d = lambda arr: pl.BlockSpec(arr.shape, lambda i: (0, 0))

    cost = pl.CostEstimate(
        flops=2 * B * (S * H1p + H1p * H2p + H2p * Ap),
        transcendentals=B * Ap,
        bytes_accessed=(B * S * 4
                        + (S * H1p + H1p * H2p + H2p * Ap) * 2
                        + (H1p + H2p + Ap) * 4
                        + B * Ap * 4),
    )

    out = pl.pallas_call(
        functools.partial(_actor_kernel, epi_dtype=epi_dtype),
        out_shape=jax.ShapeDtypeStruct((B, Ap), jnp.float32),
        grid_spec=pltpu.PrefetchScalarGridSpec(
            num_scalar_prefetch=0,
            grid=grid,
            in_specs=[
                # action_bound in SMEM: no recompile per distinct bound value.
                pl.BlockSpec(memory_space=pltpu.MemorySpace.SMEM),
                # activations: one batch tile per grid step, read as f32.
                pl.BlockSpec((tb, S), lambda i: (i, 0)),
                # weights/biases: constant block index -> VMEM-resident.
                full2d(w1), full2d(b1),
                full2d(w2), full2d(b2),
                full2d(w3), full2d(b3),
            ],
            out_specs=pl.BlockSpec((tb, Ap), lambda i: (i, 0)),
        ),
        compiler_params=pltpu.CompilerParams(
            dimension_semantics=("parallel",)),
        cost_estimate=cost,
    )(ab, x, w1, b1, w2, b2, w3, b3)

    return out[:, :action_dim]


def init_actor_params(key, state_dim, action_dim):
    """nn.Linear-style U(-1/sqrt(fan_in), 1/sqrt(fan_in)) init.
    Weights stored as (in, out) = transpose of PyTorch layout (unpadded, f32)."""
    dims = [(state_dim, 400), (400, 300), (300, action_dim)]
    params = []
    for (fan_in, fan_out) in dims:
        key, kw, kb = jax.random.split(key, 3)
        bound = 1.0 / jnp.sqrt(fan_in)
        w = jax.random.uniform(kw, (fan_in, fan_out), jnp.float32, -bound, bound)
        b = jax.random.uniform(kb, (1, fan_out), jnp.float32, -bound, bound)
        params += [w, b]
    return tuple(params)


if __name__ == "__main__":
    state_dim = 32
    action_dim = 8
    action_bound = 2.0
    batch = 2

    key = jax.random.PRNGKey(0)
    key, kx = jax.random.split(key)
    x = jax.random.normal(kx, (batch, state_dim), jnp.float32)

    params = init_actor_params(key, state_dim, action_dim)
    packed = pack_params(params)     # pad to 512/384/128, cast weights to bf16

    out = actor_forward(x, packed, action_bound, action_dim)
    jax.block_until_ready(out)

    # reference check in plain f32 JAX (kernel streams bf16 weights -> loose tol)
    w1, b1, w2, b2, w3, b3 = params
    h = jnp.maximum(x @ w1 + b1, 0.0)
    h = jnp.maximum(h @ w2 + b2, 0.0)
    ref = jnp.tanh(h @ w3 + b3) * action_bound
    assert out.shape == (batch, action_dim)
    assert jnp.allclose(out, ref, atol=5e-2, rtol=5e-2), "mismatch vs reference"

    print("KERNEL_OK")
</pallas_src>

<mosaic_0001>
module attributes {stable_mosaic.version = 11 : i64} {
  func.func @_actor_kernel(%arg0: i32, %arg1: memref<1xf32, #tpu.memory_space<smem>>, %arg2: memref<16x32xf32, #tpu.memory_space<vmem>>, %arg3: memref<32x512xbf16, #tpu.memory_space<vmem>>, %arg4: memref<1x512xf32, #tpu.memory_space<vmem>>, %arg5: memref<512x384xbf16, #tpu.memory_space<vmem>>, %arg6: memref<1x384xf32, #tpu.memory_space<vmem>>, %arg7: memref<384x128xbf16, #tpu.memory_space<vmem>>, %arg8: memref<1x128xf32, #tpu.memory_space<vmem>>, %arg9: memref<16x128xf32, #tpu.memory_space<vmem>>) attributes {dimension_semantics = [#tpu.dimension_semantics<parallel>], iteration_bounds = array<i64: 1>, scalar_prefetch = 0 : i64, scratch_operands = 0 : i64, tpu.core_type = #tpu.core_type<tc>, window_params = [{transform_indices = @transform_0, window_bounds = array<i64: 1>}, {transform_indices = @transform_1, window_bounds = array<i64: 16, 32>}, {pipeline_mode = #tpu.pipeline_mode<synchronous>, transform_indices = @transform_2, window_bounds = array<i64: 32, 512>}, {pipeline_mode = #tpu.pipeline_mode<synchronous>, transform_indices = @transform_3, window_bounds = array<i64: 1, 512>}, {pipeline_mode = #tpu.pipeline_mode<synchronous>, transform_indices = @transform_4, window_bounds = array<i64: 512, 384>}, {pipeline_mode = #tpu.pipeline_mode<synchronous>, transform_indices = @transform_5, window_bounds = array<i64: 1, 384>}, {pipeline_mode = #tpu.pipeline_mode<synchronous>, transform_indices = @transform_6, window_bounds = array<i64: 384, 128>}, {pipeline_mode = #tpu.pipeline_mode<synchronous>, transform_indices = @transform_7, window_bounds = array<i64: 1, 128>}, {transform_indices = @transform_8, window_bounds = array<i64: 16, 128>}]} {
    %c0 = arith.constant 0 : index
    %0 = memref.load %arg1[%c0] : memref<1xf32, #tpu.memory_space<smem>>
    %c0_0 = arith.constant 0 : index
    %c0_1 = arith.constant 0 : index
    %1 = vector.load %arg2[%c0_0, %c0_1] : memref<16x32xf32, #tpu.memory_space<vmem>>, vector<16x32xf32>
    %2 = arith.truncf %1 : vector<16x32xf32> to vector<16x32xbf16>
    %c0_2 = arith.constant 0 : index
    %c0_3 = arith.constant 0 : index
    %3 = vector.load %arg3[%c0_2, %c0_3] : memref<32x512xbf16, #tpu.memory_space<vmem>>, vector<32x512xbf16>
    %cst = arith.constant dense<0.000000e+00> : vector<16x512xf32>
    %4 = tpu.matmul %2, %3, %cst {dimension_numbers = #tpu.dot_dimension_numbers<[1], [0], [0], [1], [0, 0, 1, 1], [], []>} : vector<16x32xbf16>, vector<32x512xbf16>, vector<16x512xf32> -> vector<16x512xf32>
    %c0_4 = arith.constant 0 : index
    %c0_5 = arith.constant 0 : index
    %5 = vector.load %arg4[%c0_4, %c0_5] : memref<1x512xf32, #tpu.memory_space<vmem>>, vector<1x512xf32>
    %6 = vector.broadcast %5 : vector<1x512xf32> to vector<16x512xf32>
    %7 = arith.addf %4, %6 : vector<16x512xf32>
    %cst_6 = arith.constant 0.000000e+00 : f32
    %8 = vector.broadcast %cst_6 : f32 to vector<16x512xf32>
    %9 = arith.maximumf %7, %8 : vector<16x512xf32>
    %10 = arith.truncf %9 : vector<16x512xf32> to vector<16x512xbf16>
    %c0_7 = arith.constant 0 : index
    %c0_8 = arith.constant 0 : index
    %11 = vector.load %arg5[%c0_7, %c0_8] : memref<512x384xbf16, #tpu.memory_space<vmem>>, vector<512x384xbf16>
    %cst_9 = arith.constant dense<0.000000e+00> : vector<16x384xf32>
    %12 = tpu.matmul %10, %11, %cst_9 {dimension_numbers = #tpu.dot_dimension_numbers<[1], [0], [0], [1], [0, 0, 1, 1], [], []>} : vector<16x512xbf16>, vector<512x384xbf16>, vector<16x384xf32> -> vector<16x384xf32>
    %c0_10 = arith.constant 0 : index
    %c0_11 = arith.constant 0 : index
    %13 = vector.load %arg6[%c0_10, %c0_11] : memref<1x384xf32, #tpu.memory_space<vmem>>, vector<1x384xf32>
    %14 = vector.broadcast %13 : vector<1x384xf32> to vector<16x384xf32>
    %15 = arith.addf %12, %14 : vector<16x384xf32>
    %cst_12 = arith.constant 0.000000e+00 : f32
    %16 = vector.broadcast %cst_12 : f32 to vector<16x384xf32>
    %17 = arith.maximumf %15, %16 : vector<16x384xf32>
    %18 = arith.truncf %17 : vector<16x384xf32> to vector<16x384xbf16>
    %c0_13 = arith.constant 0 : index
    %c0_14 = arith.constant 0 : index
    %19 = vector.load %arg7[%c0_13, %c0_14] : memref<384x128xbf16, #tpu.memory_space<vmem>>, vector<384x128xbf16>
    %cst_15 = arith.constant dense<0.000000e+00> : vector<16x128xf32>
    %20 = tpu.matmul %18, %19, %cst_15 {dimension_numbers = #tpu.dot_dimension_numbers<[1], [0], [0], [1], [0, 0, 1, 1], [], []>} : vector<16x384xbf16>, vector<384x128xbf16>, vector<16x128xf32> -> vector<16x128xf32>
    %c0_16 = arith.constant 0 : index
    %c0_17 = arith.constant 0 : index
    %21 = vector.load %arg8[%c0_16, %c0_17] : memref<1x128xf32, #tpu.memory_space<vmem>>, vector<1x128xf32>
    %22 = vector.broadcast %21 : vector<1x128xf32> to vector<16x128xf32>
    %23 = arith.addf %20, %22 : vector<16x128xf32>
    %24 = math.tanh %23 : vector<16x128xf32>
    %25 = vector.broadcast %0 : f32 to vector<16x128xf32>
    %26 = arith.mulf %24, %25 : vector<16x128xf32>
    %c0_18 = arith.constant 0 : index
    %c0_19 = arith.constant 0 : index
    %27 = vector.load %arg9[%c0_18, %c0_19] : memref<16x128xf32, #tpu.memory_space<vmem>>, vector<16x128xf32>
    tpu.vector_store %arg9[%c0_18, %c0_19], %26 {strides = array<i32>} : memref<16x128xf32, #tpu.memory_space<vmem>>, vector<16x128xf32>,
    return
  }
  func.func @transform_0(%arg0: i32) -> i32 {
    %c0_i32 = arith.constant 0 : i32
    %c0_i32_0 = arith.constant 0 : i32
    return %c0_i32 : i32
  }
  func.func @transform_1(%arg0: i32) -> (i32, i32) {
    %c0_i32 = arith.constant 0 : i32
    %c0_i32_0 = arith.constant 0 : i32
    return %arg0, %c0_i32 : i32, i32
  }
  func.func @transform_2(%arg0: i32) -> (i32, i32) {
    %c0_i32 = arith.constant 0 : i32
    %c0_i32_0 = arith.constant 0 : i32
    %c0_i32_1 = arith.constant 0 : i32
    return %c0_i32, %c0_i32_0 : i32, i32
  }
  func.func @transform_3(%arg0: i32) -> (i32, i32) {
    %c0_i32 = arith.constant 0 : i32
    %c0_i32_0 = arith.constant 0 : i32
    %c0_i32_1 = arith.constant 0 : i32
    return %c0_i32, %c0_i32_0 : i32, i32
  }
  func.func @transform_4(%arg0: i32) -> (i32, i32) {
    %c0_i32 = arith.constant 0 : i32
    %c0_i32_0 = arith.constant 0 : i32
    %c0_i32_1 = arith.constant 0 : i32
    return %c0_i32, %c0_i32_0 : i32, i32
  }
  func.func @transform_5(%arg0: i32) -> (i32, i32) {
    %c0_i32 = arith.constant 0 : i32
    %c0_i32_0 = arith.constant 0 : i32
    %c0_i32_1 = arith.constant 0 : i32
    return %c0_i32, %c0_i32_0 : i32, i32
  }
  func.func @transform_6(%arg0: i32) -> (i32, i32) {
    %c0_i32 = arith.constant 0 : i32
    %c0_i32_0 = arith.constant 0 : i32
    %c0_i32_1 = arith.constant 0 : i32
    return %c0_i32, %c0_i32_0 : i32, i32
  }
  func.func @transform_7(%arg0: i32) -> (i32, i32) {
    %c0_i32 = arith.constant 0 : i32
    %c0_i32_0 = arith.constant 0 : i32
    %c0_i32_1 = arith.constant 0 : i32
    return %c0_i32, %c0_i32_0 : i32, i32
  }
  func.func @transform_8(%arg0: i32) -> (i32, i32) {
    %c0_i32 = arith.constant 0 : i32
    %c0_i32_0 = arith.constant 0 : i32
    return %arg0, %c0_i32 : i32, i32
  }
}

</mosaic_0001>

<bundles_post_ra>
// kernel: tpu_custom_call.1
= control target key start
LH: loop header
LB: loop body
LE: loop exit
PB: predicated region body
PF: predicated region fallthrough
CT: control target
= control target key end

     0   :  { %14 = vsyncpa [#allocation4], 0  ;;  %s2237_s0 = inlined_call_operand.<no memory space> [shape: f32[1], index: 0, kind: input, shape index: {}]   ;;  %s2238_s1 = inlined_call_operand.vmem [shape: f32[2,32], index: 1, kind: input, shape index: {}]   ;;  %s2239_s2 = inlined_call_operand.hbm [shape: bf16[32,512], index: 2, kind: input, shape index: {}]   ;;  %s2240_s3 = inlined_call_operand.hbm [shape: f32[1,512], index: 3, kind: input, shape index: {}]   ;;  %s2241_s4 = inlined_call_operand.hbm [shape: bf16[512,384], index: 4, kind: input, shape index: {}]   ;;  %s2242_s5 = inlined_call_operand.vmem [shape: f32[1,384], index: 5, kind: input, shape index: {}]   ;;  %s2243_s6 = inlined_call_operand.hbm [shape: bf16[384,128], index: 6, kind: input, shape index: {}]   ;;  %s2244_s7 = inlined_call_operand.vmem [shape: f32[1,128], index: 7, kind: input, shape index: {}]   ;;  %s2245_s8 = inlined_call_operand.hbm [shape: f32[2,128], index: 8, kind: output, shape index: {}]  }
   0x1   :  { %15 = vsyncpa [#allocation7], 0 }
   0x2   :  { %16 = vsyncpa [#allocation10], 0  ;;  %s40_s29 = sshll.u32 %s2240_s3, 4  ;;  %s41_s29 = int_to_ptr.hbm [resolvable:$true] %s40_s29 }
   0x3   :  { %17 = vsyncpa [#allocation5], 0  ;;  %s2108_s30 = smov [#allocation6]   ;;  %s26_s12 = sshll.u32 %s2239_s2, 4  ;;  %s27_s12 = int_to_ptr.hbm [resolvable:$true] %s26_s12 }
   0x4   :  { %s42_s9 = sshll.u32 %s2108_s30, 4  ;;  %s2109_s13 = smov [#allocation3]   ;;  %s43_s9 = int_to_ptr.vmem [resolvable:$true] %s42_s9 }
   0x5   :  { %45 = dma.hbm_to_vmem [thread:$0]  %s41_s29, 64, %s43_s9, [#allocation7]  }
   0x6   :  { %s28_s14 = sshll.u32 %s2109_s13, 4  ;;  %s2110_s15 = smov 256   ;;  %s29_s14 = int_to_ptr.vmem [resolvable:$true] %s28_s14 }
   0x7   :  { %s2111_s16 = smov 16   ;;  %s50_s3 = sshll.u32 %s2241_s4, 4  ;;  %s51_s3 = int_to_ptr.hbm [resolvable:$true] %s50_s3 }
   0x8   :  { %34 = dma.hbm_to_vmem [thread:$0]  %s27_s12, 1024, %s29_s14, [#allocation4], %s2110_s15, %s2110_s15, %s2111_s16  }
   0x9   :  { %s2112_s19 = smov [#allocation8]   ;;  %s65_s2 = sshll.u32 %s2243_s6, 4  ;;  %s66_s2 = int_to_ptr.hbm [resolvable:$true] %s65_s2 }
   0xa   :  { %s52_s20 = sshll.u32 %s2112_s19, 4  ;;  %s2113_s23 = smov 192   ;;  %s53_s20 = int_to_ptr.vmem [resolvable:$true] %s52_s20 }
   0xb   :  { %s2114_s24 = smov 12   ;;  %s2115_s25 = smov [#allocation9]  }
   0xc   :  { %58 = dma.hbm_to_vmem [thread:$0]  %s51_s3, 12288, %s53_s20, [#allocation7], %s2113_s23, %s2113_s23, %s2114_s24  }
   0xd   :  { %s67_s26 = sshll.u32 %s2115_s25, 4  ;;  %s2116_s27 = smov 64   ;;  %s68_s26 = int_to_ptr.vmem [resolvable:$true] %s67_s26 }
   0xe   :  { %s2117_s28 = smov 4  }
   0xf   :  { %73 = dma.hbm_to_vmem [thread:$0]  %s66_s2, 3072, %s68_s26, [#allocation10], %s2116_s27, %s2116_s27, %s2117_s28  }
  0x10   :  { %2100 = dma.done.wait [#allocation4], 1024  }
  0x11   :  { %2101 = vsyncadd [#allocation4], 4294966272 }
  0x12   :  { %2102 = dma.done.wait [#allocation7], 12352  }
  0x13   :  { %2103 = vsyncadd [#allocation7], 4294954944 }
  0x14   :  { %2104 = dma.done.wait [#allocation10], 3072  }
  0x15   :  { %2105 = vsyncadd [#allocation10], 4294964224  ;;  %v1336_v0 = vld [vmem:[#allocation3 + $0x20] sm:$0xf]  ;;  %v1840_v1 = vld [vmem:[#allocation3 + $0x2c] sm:$0xf0] }
  0x16   :  { %v1838_v2 = vld [vmem:[#allocation3 + $0x24] sm:$0xf]  ;;  %v1337_v3 = vor.u32 %v1840_v1, %v1336_v0  ;;  %v1338_v4 = vld [vmem:[#allocation3 + $0x30] sm:$0xf0]  ;;  %v1344_v5 = vld [vmem:[#allocation3 + $0x28] sm:$0xf] }
  0x17   :  { %v1841_v6 = vld [vmem:[#allocation3 + $0x34] sm:$0xf0]  ;;  %v1341_v7 = vor.u32 %v1838_v2, %v1338_v4  ;;  %v1320_v9 = vld [vmem:[#allocation3] sm:$0xf]  ;;  %v1836_v10 = vld [vmem:[#allocation3 + $0xc] sm:$0xf0] }
  0x18   :  { %v1345_v8 = vor.u32 %v1841_v6, %v1344_v5  ;;  %v1834_v11 = vld [vmem:[#allocation3 + $0x4] sm:$0xf]  ;;  %165 = vmatpush.bf16.msra.mxu3 %v1337_v3  ;;  %v1321_v12 = vor.u32 %v1836_v10, %v1320_v9  ;;  %v1322_v13 = vld [vmem:[#allocation3 + $0x10] sm:$0xf0]  ;;  %v1328_v14 = vld [vmem:[#allocation3 + $0x8] sm:$0xf] }
  0x19   :  { %v1837_v15 = vld [vmem:[#allocation3 + $0x14] sm:$0xf0]  ;;  %179 = vmatpush.bf16.msra.mxu1 %v1341_v7  ;;  %v1325_v16 = vor.u32 %v1834_v11, %v1322_v13  ;;  %v94_v18 = vld [vmem:[%s2238_s1] sm:$0xff]  ;;  %v95_v19 = vld [vmem:[%s2238_s1 + $0x8] sm:$0xff]  ;;  %vm155_vm0 = vcmask 261120  }
  0x1a   :  { %193 = vmatpush.bf16.msra.mxu2 %v1345_v8  ;;  %v1329_v17 = vor.u32 %v1837_v15, %v1328_v14  ;;  %v1839_v20 = vld [vmem:[#allocation3 + $0x2c] sm:$0xf]  ;;  %v1346_v21 = vld [vmem:[#allocation3 + $0x38] sm:$0xf0]  ;;  %v2184_v24 = vpack.c.bf16 %v95_v19, %v94_v18  ;;  %v1888_v27 = vld [vmem:[#allocation8 + $0x170] sm:$0xf0] }
  0x1b   :  { %v1835_v22 = vld [vmem:[#allocation3 + $0xc] sm:$0xf]  ;;  %v1330_v23 = vld [vmem:[#allocation3 + $0x18] sm:$0xf0]  ;;  %v1349_v25 = vor.u32 %v1839_v20, %v1346_v21  ;;  %v1524_v28 = vld [vmem:[#allocation8 + $0x150] sm:$0xf] }
  0x1c   :  { %v1536_v26 = vld [vmem:[#allocation8 + $0x168] sm:$0xf]  ;;  %166 = vmatpush.bf16.msra.mxu3 %v1321_v12  ;;  %v1885_v30 = vld [vmem:[#allocation8 + $0x158] sm:$0xf0]  ;;  %v1864_v32 = vld [vmem:[#allocation8 + $0xb0] sm:$0xf0]  ;;  %v1333_v36 = vor.u32 %v1835_v22, %v1330_v23 }
  0x1d   :  { %v1537_v29 = vor.u32 %v1888_v27, %v1536_v26  ;;  %v1440_v31 = vld [vmem:[#allocation8 + $0xa8] sm:$0xf]  ;;  %180 = vmatpush.bf16.msra.mxu1 %v1325_v16  ;;  %v1912_v35 = vld [vmem:[#allocation8 + $0x230] sm:$0xf0]  ;;  %v1525_v37 = vor.u32 %v1885_v30, %v1524_v28  ;;  %v1512_v39 = vld [vmem:[#allocation8 + $0x138] sm:$0xf] }
  0x1e   :  { %194 = vmatpush.bf16.msra.mxu2 %v1329_v17  ;;  %v1441_v33 = vor.u32 %v1864_v32, %v1440_v31  ;;  %v1632_v34 = vld [vmem:[#allocation8 + $0x228] sm:$0xf]  ;;  %v1428_v40 = vld [vmem:[#allocation8 + $0x90] sm:$0xf]  ;;  %v1861_v41 = vld [vmem:[#allocation8 + $0x98] sm:$0xf0] }
  0x1f   :  { %v1633_v38 = vor.u32 %v1912_v35, %v1632_v34  ;;  %1350 = vmatmul.msk.bf16.vlgmr.msra.gmra.mxu3 %vm155_vm0, %v2184_v24  ;;  %v1882_v42 = vld [vmem:[#allocation8 + $0x140] sm:$0xf0]  ;;  %v1429_v43 = vor.u32 %v1861_v41, %v1428_v40  ;;  %v1620_v44 = vld [vmem:[#allocation8 + $0x210] sm:$0xf]  ;;  %v1909_v45 = vld [vmem:[#allocation8 + $0x218] sm:$0xf0] }
  0x20   :  { %207 = vmatpush.bf16.msrb.mxu3 %v1349_v25  ;;  %875 = vmatpush.bf16.msra.mxu0 %v1441_v33  ;;  %v1416_v46 = vld [vmem:[#allocation8 + $0x78] sm:$0xf]  ;;  %v1858_v47 = vld [vmem:[#allocation8 + $0x80] sm:$0xf0]  ;;  %v1621_v48 = vor.u32 %v1909_v45, %v1620_v44  ;;  %v1513_v49 = vor.u32 %v1882_v42, %v1512_v39  ;;  %v1500_v52 = vld [vmem:[#allocation8 + $0x120] sm:$0xf] }
  0x21   :  { %889 = vmatpush.bf16.msrb.mxu1 %v1537_v29  ;;  %1352 = vmatmul.msk.bf16.vlgmr.msra.gmra.mxu2 %vm155_vm0, %v2184_v24  ;;  %v1608_v50 = vld [vmem:[#allocation8 + $0x1f8] sm:$0xf]  ;;  %v1906_v51 = vld [vmem:[#allocation8 + $0x200] sm:$0xf0]  ;;  %v1879_v53 = vld [vmem:[#allocation8 + $0x128] sm:$0xf0]  ;;  %v1417_v54 = vor.u32 %v1858_v47, %v1416_v46 }
  0x22   :  { %1351 = vmatmul.msk.bf16.vlgmr.msra.gmra.mxu1 %vm155_vm0, %v2184_v24  ;;  %903 = vmatpush.bf16.msrb.mxu2 %v1633_v38  ;;  %v1404_v55 = vld [vmem:[#allocation8 + $0x60] sm:$0xf]  ;;  %v1855_v56 = vld [vmem:[#allocation8 + $0x68] sm:$0xf0]  ;;  %v1609_v57 = vor.u32 %v1906_v51, %v1608_v50  ;;  %v1728_v58 = vld [vmem:[#allocation8 + $0x2e8] sm:$0xf]  ;;  %v1501_v59 = vor.u32 %v1879_v53, %v1500_v52 }
  0x23   :  { %v1596_v60 = vld [vmem:[#allocation8 + $0x1e0] sm:$0xf]  ;;  %v1903_v61 = vld [vmem:[#allocation8 + $0x1e8] sm:$0xf0]  ;;  %v1936_v62 = vld [vmem:[#allocation8 + $0x2f0] sm:$0xf0]  ;;  %v1405_v1 = vor.u32 %v1855_v56, %v1404_v55 }
  0x24   :  { %208 = vmatpush.bf16.msrb.mxu3 %v1333_v36  ;;  %876 = vmatpush.bf16.msra.mxu0 %v1429_v43  ;;  %v1488_v63 = vld [vmem:[#allocation8 + $0x108] sm:$0xf]  ;;  %v1876_v0 = vld [vmem:[#allocation8 + $0x110] sm:$0xf0]  ;;  %v1729_v3 = vor.u32 %v1936_v62, %v1728_v58  ;;  %v1716_v5 = vld [vmem:[#allocation8 + $0x2d0] sm:$0xf]  ;;  %v1597_v7 = vor.u32 %v1903_v61, %v1596_v60 }
  0x25   :  { %890 = vmatpush.bf16.msrb.mxu1 %v1525_v37  ;;  %v1392_v2 = vld [vmem:[#allocation8 + $0x48] sm:$0xf]  ;;  %v1852_v4 = vld [vmem:[#allocation8 + $0x50] sm:$0xf0]  ;;  %v1933_v6 = vld [vmem:[#allocation8 + $0x2d8] sm:$0xf0]  ;;  %v1489_v9 = vor.u32 %v1876_v0, %v1488_v63 }
  0x26   :  { %904 = vmatpush.bf16.msrb.mxu2 %v1621_v48  ;;  %v1717_v8 = vor.u32 %v1933_v6, %v1716_v5  ;;  %v1584_v10 = vld [vmem:[#allocation8 + $0x1c8] sm:$0xf]  ;;  %v1900_v11 = vld [vmem:[#allocation8 + $0x1d0] sm:$0xf0]  ;;  %v1476_v12 = vld [vmem:[#allocation8 + $0xf0] sm:$0xf]  ;;  %v1393_v14 = vor.u32 %v1852_v4, %v1392_v2 }
  0x27   :  { %v1873_v13 = vld [vmem:[#allocation8 + $0xf8] sm:$0xf0]  ;;  %v1704_v15 = vld [vmem:[#allocation8 + $0x2b8] sm:$0xf]  ;;  %v1380_v16 = vld [vmem:[#allocation8 + $0x30] sm:$0xf]  ;;  %v1585_v19 = vor.u32 %v1900_v11, %v1584_v10 }
  0x28   :  { %877 = vmatpush.bf16.msra.mxu0 %v1417_v54  ;;  %917 = vmatpush.bf16.msra.mxu3 %v1729_v3  ;;  %v1849_v17 = vld [vmem:[#allocation8 + $0x38] sm:$0xf0]  ;;  %v1930_v18 = vld [vmem:[#allocation8 + $0x2c0] sm:$0xf0]  ;;  %v1572_v20 = vld [vmem:[#allocation8 + $0x1b0] sm:$0xf]  ;;  %v1477_v22 = vor.u32 %v1873_v13, %v1476_v12 }
  0x29   :  { %891 = vmatpush.bf16.msrb.mxu1 %v1513_v49  ;;  %v1705_v21 = vor.u32 %v1930_v18, %v1704_v15  ;;  %v1897_v23 = vld [vmem:[#allocation8 + $0x1b8] sm:$0xf0]  ;;  %v1692_v25 = vld [vmem:[#allocation8 + $0x2a0] sm:$0xf]  ;;  %v1927_v26 = vld [vmem:[#allocation8 + $0x2a8] sm:$0xf0]  ;;  %v1381_v29 = vor.u32 %v1849_v17, %v1380_v16 }
  0x2a   :  { %905 = vmatpush.bf16.msrb.mxu2 %v1609_v57  ;;  %v1464_v27 = vld [vmem:[#allocation8 + $0xd8] sm:$0xf]  ;;  %v1870_v28 = vld [vmem:[#allocation8 + $0xe0] sm:$0xf0]  ;;  %v1573_v32 = vor.u32 %v1897_v23, %v1572_v20  ;;  %v1452_v33 = vld [vmem:[#allocation8 + $0xc0] sm:$0xf]  ;;  %v1693_v35 = vor.u32 %v1927_v26, %v1692_v25 }
  0x2b   :  { %v1368_v30 = vld [vmem:[#allocation8 + $0x18] sm:$0xf]  ;;  %v1846_v31 = vld [vmem:[#allocation8 + $0x20] sm:$0xf0]  ;;  %v1465_v36 = vor.u32 %v1870_v28, %v1464_v27  ;;  %v1680_v38 = vld [vmem:[#allocation8 + $0x288] sm:$0xf] }
  0x2c   :  { %878 = vmatpush.bf16.msra.mxu0 %v1405_v1  ;;  %918 = vmatpush.bf16.msra.mxu3 %v1717_v8  ;;  %v1560_v34 = vld [vmem:[#allocation8 + $0x198] sm:$0xf]  ;;  %v1894_v37 = vld [vmem:[#allocation8 + $0x1a0] sm:$0xf0]  ;;  %v1924_v39 = vld [vmem:[#allocation8 + $0x290] sm:$0xf0]  ;;  %v1369_v42 = vor.u32 %v1846_v31, %v1368_v30 }
  0x2d   :  { %892 = vmatpush.bf16.msrb.mxu1 %v1501_v59  ;;  %v1867_v40 = vld [vmem:[#allocation8 + $0xc8] sm:$0xf0]  ;;  %v1538_v41 = vld [vmem:[#allocation8 + $0x174] sm:$0xf0]  ;;  %v1356_v43 = vld [vmem:[#allocation8] sm:$0xf]  ;;  %v1561_v45 = vor.u32 %v1894_v37, %v1560_v34  ;;  %v1681_v48 = vor.u32 %v1924_v39, %v1680_v38 }
  0x2e   :  { %906 = vmatpush.bf16.msrb.mxu2 %v1597_v7  ;;  %v1843_v44 = vld [vmem:[#allocation8 + $0x8] sm:$0xf0]  ;;  %v1442_v47 = vld [vmem:[#allocation8 + $0xb4] sm:$0xf0]  ;;  %v1453_v49 = vor.u32 %v1867_v40, %v1452_v33  ;;  %v1548_v50 = vld [vmem:[#allocation8 + $0x180] sm:$0xf] }
  0x2f   :  { %1353 = vmatmul.msk.bf16.vlgmr.msrb.gmra.mxu3 %vm155_vm0, %v2184_v24  ;;  %v1887_v24 = vld [vmem:[#allocation8 + $0x16c] sm:$0xf]  ;;  %v1357_v53 = vor.u32 %v1843_v44, %v1356_v43  ;;  %v1634_v55 = vld [vmem:[#allocation8 + $0x234] sm:$0xf0]  ;;  %v1884_v56 = vld [vmem:[#allocation8 + $0x154] sm:$0xf] }
  0x30   :  { %879 = vmatpush.bf16.msra.mxu0 %v1393_v14  ;;  %919 = vmatpush.bf16.msra.mxu3 %v1705_v21  ;;  %v1863_v46 = vld [vmem:[#allocation8 + $0xac] sm:$0xf]  ;;  %v1541_v52 = vor.u32 %v1887_v24, %v1538_v41  ;;  %v1526_v57 = vld [vmem:[#allocation8 + $0x15c] sm:$0xf0]  ;;  %v1860_v60 = vld [vmem:[#allocation8 + $0x94] sm:$0xf] }
  0x31   :  { %893 = vmatpush.bf16.msrb.mxu1 %v1489_v9  ;;  %v1891_v51 = vld [vmem:[#allocation8 + $0x188] sm:$0xf0]  ;;  %v1445_v58 = vor.u32 %v1863_v46, %v1442_v47  ;;  %v1430_v61 = vld [vmem:[#allocation8 + $0x9c] sm:$0xf0]  ;;  %v1529_v63 = vor.u32 %v1884_v56, %v1526_v57  ;;  %v1908_v0 = vld [vmem:[#allocation8 + $0x214] sm:$0xf] }
  0x32   :  { %907 = vmatpush.bf16.msrb.mxu2 %v1585_v19  ;;  %v1911_v54 = vld [vmem:[#allocation8 + $0x22c] sm:$0xf]  ;;  %v1549_v59 = vor.u32 %v1891_v51, %v1548_v50  ;;  %v1622_v1 = vld [vmem:[#allocation8 + $0x21c] sm:$0xf0]  ;;  %v1881_v2 = vld [vmem:[#allocation8 + $0x13c] sm:$0xf]  ;;  %v1433_v4 = vor.u32 %v1860_v60, %v1430_v61 }
  0x33   :  { %v1637_v62 = vor.u32 %v1911_v54, %v1634_v55  ;;  %v1514_v3 = vld [vmem:[#allocation8 + $0x144] sm:$0xf0]  ;;  %v1625_v5 = vor.u32 %v1908_v0, %v1622_v1  ;;  %v1878_v7 = vld [vmem:[#allocation8 + $0x124] sm:$0xf]  ;;  %v1502_v8 = vld [vmem:[#allocation8 + $0x12c] sm:$0xf0] }
  0x34   :  { %880 = vmatpush.bf16.msra.mxu0 %v1381_v29  ;;  %920 = vmatpush.bf16.msra.mxu3 %v1693_v35  ;;  %v1517_v6 = vor.u32 %v1881_v2, %v1514_v3  ;;  %v1505_v9 = vor.u32 %v1878_v7, %v1502_v8  ;;  %v1668_v10 = vld [vmem:[#allocation8 + $0x270] sm:$0xf]  ;;  %v1921_v11 = vld [vmem:[#allocation8 + $0x278] sm:$0xf0]  ;;  %v1418_v14 = vld [vmem:[#allocation8 + $0x84] sm:$0xf0] }
  0x35   :  { %894 = vmatpush.bf16.msrb.mxu1 %v1477_v22  ;;  %v1669_v12 = vor.u32 %v1921_v11, %v1668_v10  ;;  %v1857_v13 = vld [vmem:[#allocation8 + $0x7c] sm:$0xf]  ;;  %v1610_v17 = vld [vmem:[#allocation8 + $0x204] sm:$0xf0]  ;;  %v1875_v19 = vld [vmem:[#allocation8 + $0x10c] sm:$0xf] }
  0x36   :  { %908 = vmatpush.bf16.msrb.mxu2 %v1573_v32  ;;  %v1905_v15 = vld [vmem:[#allocation8 + $0x1fc] sm:$0xf]  ;;  %v1421_v16 = vor.u32 %v1857_v13, %v1418_v14  ;;  %v1490_v20 = vld [vmem:[#allocation8 + $0x114] sm:$0xf0]  ;;  %v1918_v23 = vld [vmem:[#allocation8 + $0x260] sm:$0xf0] }
  0x37   :  { %v1613_v18 = vor.u32 %v1905_v15, %v1610_v17  ;;  %v1493_v21 = vor.u32 %v1875_v19, %v1490_v20  ;;  %v1656_v22 = vld [vmem:[#allocation8 + $0x258] sm:$0xf]  ;;  %v1854_v26 = vld [vmem:[#allocation8 + $0x64] sm:$0xf]  ;;  %v1406_v27 = vld [vmem:[#allocation8 + $0x6c] sm:$0xf0] }
  0x38   :  { %881 = vmatpush.bf16.msra.mxu0 %v1369_v42  ;;  %921 = vmatpush.bf16.msra.mxu3 %v1681_v48  ;;  %v1657_v25 = vor.u32 %v1918_v23, %v1656_v22  ;;  %v1902_v28 = vld [vmem:[#allocation8 + $0x1e4] sm:$0xf]  ;;  %v1409_v29 = vor.u32 %v1854_v26, %v1406_v27  ;;  %v1598_v30 = vld [vmem:[#allocation8 + $0x1ec] sm:$0xf0]  ;;  %v1872_v32 = vld [vmem:[#allocation8 + $0xf4] sm:$0xf] }
  0x39   :  { %895 = vmatpush.bf16.msrb.mxu1 %v1465_v36  ;;  %v1601_v31 = vor.u32 %v1902_v28, %v1598_v30  ;;  %v1478_v33 = vld [vmem:[#allocation8 + $0xfc] sm:$0xf0]  ;;  %v1915_v36 = vld [vmem:[#allocation8 + $0x248] sm:$0xf0]  ;;  %v1394_v39 = vld [vmem:[#allocation8 + $0x54] sm:$0xf0] }
  0x3a   :  { %909 = vmatpush.bf16.msrb.mxu2 %v1561_v45  ;;  %v1481_v34 = vor.u32 %v1872_v32, %v1478_v33  ;;  %v1644_v35 = vld [vmem:[#allocation8 + $0x240] sm:$0xf]  ;;  %v1851_v38 = vld [vmem:[#allocation8 + $0x4c] sm:$0xf]  ;;  %v1586_v41 = vld [vmem:[#allocation8 + $0x1d4] sm:$0xf0] }
  0x3b   :  { %v1645_v37 = vor.u32 %v1915_v36, %v1644_v35  ;;  %v1899_v40 = vld [vmem:[#allocation8 + $0x1cc] sm:$0xf]  ;;  %v1397_v24 = vor.u32 %v1851_v38, %v1394_v39  ;;  %v1730_v43 = vld [vmem:[#allocation8 + $0x2f4] sm:$0xf0]  ;;  %v1869_v46 = vld [vmem:[#allocation8 + $0xdc] sm:$0xf] }
  0x3c   :  { %882 = vmatpush.bf16.msra.mxu0 %v1357_v53  ;;  %922 = vmatpush.bf16.msra.mxu3 %v1669_v12  ;;  %v1935_v42 = vld [vmem:[#allocation8 + $0x2ec] sm:$0xf]  ;;  %v1589_v44 = vor.u32 %v1899_v40, %v1586_v41  ;;  %v1466_v47 = vld [vmem:[#allocation8 + $0xe4] sm:$0xf0]  ;;  %v1382_v50 = vld [vmem:[#allocation8 + $0x3c] sm:$0xf0] }
  0x3d   :  { %896 = vmatpush.bf16.msrb.mxu1 %v1453_v49  ;;  %v1733_v45 = vor.u32 %v1935_v42, %v1730_v43  ;;  %v1469_v48 = vor.u32 %v1869_v46, %v1466_v47  ;;  %v1848_v49 = vld [vmem:[#allocation8 + $0x34] sm:$0xf]  ;;  %v1574_v53 = vld [vmem:[#allocation8 + $0x1bc] sm:$0xf0]  ;;  %v1845_v61 = vld [vmem:[#allocation8 + $0x1c] sm:$0xf] }
  0x3e   :  { %910 = vmatpush.bf16.msrb.mxu2 %v1549_v59  ;;  %v1896_v51 = vld [vmem:[#allocation8 + $0x1b4] sm:$0xf]  ;;  %v1718_v55 = vld [vmem:[#allocation8 + $0x2dc] sm:$0xf0]  ;;  %v1454_v59 = vld [vmem:[#allocation8 + $0xcc] sm:$0xf0] }
  0x3f   :  { %v1932_v54 = vld [vmem:[#allocation8 + $0x2d4] sm:$0xf]  ;;  %v1577_v56 = vor.u32 %v1896_v51, %v1574_v53  ;;  %v1562_v1 = vld [vmem:[#allocation8 + $0x1a4] sm:$0xf0]  ;;  %v1929_v2 = vld [vmem:[#allocation8 + $0x2bc] sm:$0xf] }
  0x40   :  { %931 = vmatpush.bf16.msrb.mxu0 %v1445_v58  ;;  %923 = vmatpush.bf16.msra.mxu3 %v1657_v25  ;;  %v1721_v57 = vor.u32 %v1932_v54, %v1718_v55  ;;  %v1866_v58 = vld [vmem:[#allocation8 + $0xc4] sm:$0xf]  ;;  %v1706_v3 = vld [vmem:[#allocation8 + $0x2c4] sm:$0xf0]  ;;  %v1358_v7 = vld [vmem:[#allocation8 + $0xc] sm:$0xf0] }
  0x41   :  { %945 = vmatpush.bf16.msra.mxu1 %v1541_v52  ;;  %v1385_v52 = vor.u32 %v1848_v49, %v1382_v50  ;;  %v1457_v60 = vor.u32 %v1866_v58, %v1454_v59  ;;  %v1890_v8 = vld [vmem:[#allocation8 + $0x184] sm:$0xf]  ;;  %v1550_v10 = vld [vmem:[#allocation8 + $0x18c] sm:$0xf0]  ;;  %v1923_v15 = vld [vmem:[#allocation8 + $0x28c] sm:$0xf] }
  0x42   :  { %959 = vmatpush.bf16.msra.mxu2 %v1637_v62  ;;  %v1370_v62 = vld [vmem:[#allocation8 + $0x24] sm:$0xf0]  ;;  %v1926_v11 = vld [vmem:[#allocation8 + $0x2a4] sm:$0xf]  ;;  %v1694_v12 = vld [vmem:[#allocation8 + $0x2ac] sm:$0xf0]  ;;  %v1553_v13 = vor.u32 %v1890_v8, %v1550_v10 }
  0x43   :  { %v1373_v0 = vor.u32 %v1845_v61, %v1370_v62  ;;  %v1697_v14 = vor.u32 %v1926_v11, %v1694_v12  ;;  %v1670_v19 = vld [vmem:[#allocation8 + $0x27c] sm:$0xf0]  ;;  %v1658_v22 = vld [vmem:[#allocation8 + $0x264] sm:$0xf0]  ;;  %v2194_v25 = vld [vmem:[#allocation6] sm:$0xf] }
  0x44   :  { %932 = vmatpush.bf16.msrb.mxu0 %v1433_v4  ;;  %924 = vmatpush.bf16.msra.mxu3 %v1645_v37  ;;  %v108_v27 = vperm.slane %v2194_v25, 1  ;;  %v1914_v28 = vld [vmem:[#allocation8 + $0x244] sm:$0xf]  ;;  %v107_v35 = vperm.slane %v2194_v25, 0  ;;  %v1544_v39 = vld [vmem:[#allocation8 + $0x170] sm:$0xf] }
  0x45   :  { %946 = vmatpush.bf16.msra.mxu1 %v1529_v63  ;;  %v1893_v63 = vld [vmem:[#allocation8 + $0x19c] sm:$0xf]  ;;  %v1532_v46 = vld [vmem:[#allocation8 + $0x158] sm:$0xf]  ;;  %v1886_v47 = vld [vmem:[#allocation8 + $0x160] sm:$0xf0] }
  0x46   :  { %960 = vmatpush.bf16.msra.mxu2 %v1625_v5  ;;  %v1565_v4 = vor.u32 %v1893_v63, %v1562_v1  ;;  %v1709_v5 = vor.u32 %v1929_v2, %v1706_v3  ;;  %v1889_v40 = vld [vmem:[#allocation8 + $0x178] sm:$0xf0]  ;;  %v1448_v50 = vld [vmem:[#allocation8 + $0xb0] sm:$0xf]  ;;  %v1533_v58 = vor.u32 %v1886_v47, %v1532_v46  ;;  %v1520_v61 = vld [vmem:[#allocation8 + $0x140] sm:$0xf] }
  0x47   :  { %v1545_v43 = vor.u32 %v1889_v40, %v1544_v39  ;;  %v1865_v51 = vld [vmem:[#allocation8 + $0xb8] sm:$0xf0]  ;;  %v1640_v54 = vld [vmem:[#allocation8 + $0x230] sm:$0xf]  ;;  %v1883_v62 = vld [vmem:[#allocation8 + $0x148] sm:$0xf0] }
  0x48   :  { %933 = vmatpush.bf16.msrb.mxu0 %v1421_v16  ;;  %973 = vmatpush.bf16.msrb.mxu3 %v1733_v45  ;;  %v1682_v16 = vld [vmem:[#allocation8 + $0x294] sm:$0xf0]  ;;  %v1913_v55 = vld [vmem:[#allocation8 + $0x238] sm:$0xf0]  ;;  %v1862_v2 = vld [vmem:[#allocation8 + $0xa0] sm:$0xf0] }
  0x49   :  { %947 = vmatpush.bf16.msra.mxu1 %v1517_v6  ;;  %v1842_v6 = vld [vmem:[#allocation8 + $0x4] sm:$0xf]  ;;  %v1685_v17 = vor.u32 %v1923_v15, %v1682_v16  ;;  %v1436_v1 = vld [vmem:[#allocation8 + $0x98] sm:$0xf]  ;;  %v1880_v10 = vld [vmem:[#allocation8 + $0x130] sm:$0xf0] }
  0x4a   :  { %961 = vmatpush.bf16.msra.mxu2 %v1613_v18  ;;  %v1920_v18 = vld [vmem:[#allocation8 + $0x274] sm:$0xf]  ;;  %v1437_v8 = vor.u32 %v1862_v2, %v1436_v1  ;;  %v1424_v12 = vld [vmem:[#allocation8 + $0x80] sm:$0xf]  ;;  %v1907_v15 = vld [vmem:[#allocation8 + $0x208] sm:$0xf0] }
  0x4b   :  { %v1673_v20 = vor.u32 %v1920_v18, %v1670_v19  ;;  %v110_v16 = vperm.slane %v2194_v25, 3  ;;  %v1496_v19 = vld [vmem:[#allocation8 + $0x110] sm:$0xf]  ;;  %v1568_v1 = vld [vmem:[#allocation8 + $0x1a0] sm:$0xf] }
  0x4c   :  { %934 = vmatpush.bf16.msrb.mxu0 %v1409_v29  ;;  %974 = vmatpush.bf16.msrb.mxu3 %v1721_v57  ;;  %v1646_v29 = vld [vmem:[#allocation8 + $0x24c] sm:$0xf0]  ;;  %v1895_v2 = vld [vmem:[#allocation8 + $0x1a8] sm:$0xf0] }
  0x4d   :  { %948 = vmatpush.bf16.msra.mxu1 %v1505_v9  ;;  %v1361_v9 = vor.u32 %v1842_v6, %v1358_v7  ;;  %v1649_v30 = vor.u32 %v1914_v28, %v1646_v29  ;;  %v1521_v6 = vor.u32 %v1883_v62, %v1520_v61  ;;  %v1376_v61 = vld [vmem:[#allocation8 + $0x20] sm:$0xf] }
  0x4e   :  { %962 = vmatpush.bf16.msra.mxu2 %v1601_v31 }
  0x50   :  { %935 = vmatpush.bf16.msrb.mxu0 %v1397_v24  ;;  %975 = vmatpush.bf16.msrb.mxu3 %v1709_v5  ;;  %v1910_v5 = vld [vmem:[#allocation8 + $0x220] sm:$0xf0] }
  0x51   :  { %949 = vmatpush.bf16.msra.mxu1 %v1493_v21  ;;  %v1917_v21 = vld [vmem:[#allocation8 + $0x25c] sm:$0xf] }
  0x52   :  { %963 = vmatpush.bf16.msra.mxu2 %v1589_v44  ;;  %v1661_v23 = vor.u32 %v1917_v21, %v1658_v22  ;;  %v1412_v22 = vld [vmem:[#allocation8 + $0x68] sm:$0xf] }
  0x54   :  { %936 = vmatpush.bf16.msrb.mxu0 %v1385_v52  ;;  %976 = vmatpush.bf16.msrb.mxu3 %v1697_v14  ;;  %v1616_v14 = vld [vmem:[#allocation8 + $0x200] sm:$0xf] }
  0x55   :  { %950 = vmatpush.bf16.msra.mxu1 %v1481_v34  ;;  %v109_v34 = vperm.slane %v2194_v25, 2  ;;  %v1617_v21 = vor.u32 %v1907_v15, %v1616_v14  ;;  %v1874_v25 = vld [vmem:[#allocation8 + $0x100] sm:$0xf0]  ;;  %v1700_v14 = vld [vmem:[#allocation8 + $0x2a8] sm:$0xf] }
  0x56   :  { %964 = vmatpush.bf16.msra.mxu2 %v1577_v56  ;;  %v1928_v15 = vld [vmem:[#allocation8 + $0x2b0] sm:$0xf0] }
  0x58   :  { %937 = vmatpush.bf16.msrb.mxu0 %v1373_v0  ;;  %977 = vmatpush.bf16.msrb.mxu3 %v1685_v17  ;;  %v1641_v0 = vor.u32 %v1913_v55, %v1640_v54  ;;  %v1724_v55 = vld [vmem:[#allocation8 + $0x2d8] sm:$0xf] }
  0x59   :  { %951 = vmatpush.bf16.msra.mxu1 %v1469_v48 }
  0x5a   :  { %965 = vmatpush.bf16.msra.mxu2 %v1565_v4  ;;  %v1628_v4 = vld [vmem:[#allocation8 + $0x218] sm:$0xf] }
  0x5b   :  { %v1629_v11 = vor.u32 %v1910_v5, %v1628_v4  ;;  %v1712_v5 = vld [vmem:[#allocation8 + $0x2c0] sm:$0xf] }
  0x5c   :  { %938 = vmatpush.bf16.msrb.mxu0 %v1361_v9  ;;  %978 = vmatpush.bf16.msrb.mxu3 %v1673_v20  ;;  %v1508_v9 = vld [vmem:[#allocation8 + $0x128] sm:$0xf]  ;;  %v1877_v20 = vld [vmem:[#allocation8 + $0x118] sm:$0xf0] }
  0x5d   :  { %952 = vmatpush.bf16.msra.mxu1 %v1457_v60  ;;  %v1449_v60 = vor.u32 %v1865_v51, %v1448_v50  ;;  %v1509_v17 = vor.u32 %v1880_v10, %v1508_v9  ;;  %v1497_v29 = vor.u32 %v1877_v20, %v1496_v19  ;;  %v1850_v51 = vld [vmem:[#allocation8 + $0x40] sm:$0xf0]  ;;  %v1364_v9 = vld [vmem:[#allocation8 + $0x8] sm:$0xf]  ;;  %v1688_v19 = vld [vmem:[#allocation8 + $0x290] sm:$0xf] }
  0x5e   :  { %966 = vmatpush.bf16.msra.mxu2 %v1553_v13  ;;  %v1859_v13 = vld [vmem:[#allocation8 + $0x88] sm:$0xf0]  ;;  %v1925_v20 = vld [vmem:[#allocation8 + $0x298] sm:$0xf0] }
  0x5f   :  { %v1425_v18 = vor.u32 %v1859_v13, %v1424_v12  ;;  %v1556_v12 = vld [vmem:[#allocation8 + $0x188] sm:$0xf]  ;;  %v1892_v13 = vld [vmem:[#allocation8 + $0x190] sm:$0xf0] }
  0x60   :  { %979 = vmatpush.bf16.msrb.mxu3 %v1661_v23  ;;  %v1856_v23 = vld [vmem:[#allocation8 + $0x70] sm:$0xf0] }
  0x64   :  { %980 = vmatpush.bf16.msrb.mxu3 %v1649_v30 }
  0x9f   :  { %v182_v26 = vpop.f32.mrf.mxu1 }
  0xa0   :  { %v183_v31 = vadd.f32 %v182_v26, %v108_v27  ;;  %v1604_v26 = vld [vmem:[#allocation8 + $0x1e8] sm:$0xf] }
  0xa2   :  { %v168_v32 = vpop.f32.mrf.mxu3  ;;  %v216_v37 = vmax.f32 %v183_v31, 0.0  ;;  %v1413_v31 = vor.u32 %v1856_v23, %v1412_v22  ;;  %v1676_v22 = vld [vmem:[#allocation8 + $0x278] sm:$0xf]  ;;  %v1922_v23 = vld [vmem:[#allocation8 + $0x280] sm:$0xf0] }
  0xa3   :  { %v169_v42 = vadd.f32 %v168_v32, %v107_v35  ;;  %v1484_v32 = vld [vmem:[#allocation8 + $0xf8] sm:$0xf] }
  0xa4   :  { %v196_v33 = vpop.f32.mrf.mxu2 }
  0xa5   :  { %v197_v24 = vadd.f32 %v196_v33, %v109_v34  ;;  %v215_v56 = vmax.f32 %v169_v42, 0.0  ;;  %v1937_v42 = vld [vmem:[#allocation8 + $0x2f8] sm:$0xf0] }
  0xa7   :  { %v184_v36 = vpop.f32.mrf.mxu1  ;;  %v217_v52 = vmax.f32 %v197_v24, 0.0  ;;  %v1485_v24 = vor.u32 %v1874_v25, %v1484_v32  ;;  %v1945_v32 = vld [vmem:[#allocation9 + $0x38] sm:$0xff]  ;;  %v1944_v25 = vld [vmem:[#allocation9 + $0x30] sm:$0xff] }
  0xa8   :  { %v185_v38 = vadd.f32 %v184_v36, %v108_v27  ;;  %v1904_v27 = vld [vmem:[#allocation8 + $0x1f0] sm:$0xf0]  ;;  %v1853_v36 = vld [vmem:[#allocation8 + $0x58] sm:$0xf0] }
  0xaa   :  { %v220_v41 = vmax.f32 %v185_v38, 0.0  ;;  %v170_v45 = vpop.f32.mrf.mxu3  ;;  %v1901_v38 = vld [vmem:[#allocation8 + $0x1d8] sm:$0xf0] }
  0xab   :  { %v171_v48 = vadd.f32 %v170_v45, %v107_v35  ;;  %v1400_v35 = vld [vmem:[#allocation8 + $0x50] sm:$0xf]  ;;  %v1871_v45 = vld [vmem:[#allocation8 + $0xe8] sm:$0xf0] }
  0xac   :  { %v2199_v44 = vpack.c.bf16 %v220_v41, %v216_v37  ;;  %v198_v49 = vpop.f32.mrf.mxu2  ;;  %v1592_v37 = vld [vmem:[#allocation8 + $0x1d0] sm:$0xf]  ;;  %v1401_v47 = vor.u32 %v1853_v36, %v1400_v35 }
  0xad   :  { %v199_v53 = vadd.f32 %v198_v49, %v109_v34  ;;  %v219_v57 = vmax.f32 %v171_v48, 0.0  ;;  %v1605_v34 = vor.u32 %v1904_v27, %v1604_v26  ;;  %v1736_v41 = vld [vmem:[#allocation8 + $0x2f0] sm:$0xf]  ;;  %v1593_v48 = vor.u32 %v1901_v38, %v1592_v37  ;;  %v1388_v49 = vld [vmem:[#allocation8 + $0x38] sm:$0xf]  ;;  %v1939_v37 = vld [vmem:[#allocation9 + $0x8] sm:$0xff] }
  0xae   :  { %897 = vmatmul.bf16.vlgmr.msrb.gmra.mxu1 %v2199_v44  ;;  %v1737_v50 = vor.u32 %v1937_v42, %v1736_v41  ;;  %v1677_v26 = vor.u32 %v1922_v23, %v1676_v22  ;;  %v1664_v27 = vld [vmem:[#allocation8 + $0x260] sm:$0xf]  ;;  %v1940_v35 = vld [vmem:[#allocation9 + $0x10] sm:$0xff]  ;;  %v1951_v38 = vld [vmem:[#allocation9 + $0x68] sm:$0xff] }
  0xaf   :  { %1001 = vmatpush.bf16.msrb.mxu1 %v1545_v43  ;;  %v221_v59 = vmax.f32 %v199_v53, 0.0  ;;  %v2202_v63 = vpack.c.bf16 %v219_v57, %v215_v56  ;;  %v1472_v43 = vld [vmem:[#allocation8 + $0xe0] sm:$0xf]  ;;  %v1898_v53 = vld [vmem:[#allocation8 + $0x1c0] sm:$0xf0]  ;;  %v1952_v36 = vld [vmem:[#allocation9 + $0x70] sm:$0xff] }
  0xb0   :  { %v1473_v54 = vor.u32 %v1871_v45, %v1472_v43  ;;  %v1934_v56 = vld [vmem:[#allocation8 + $0x2e0] sm:$0xf0]  ;;  %v1460_v57 = vld [vmem:[#allocation8 + $0xc8] sm:$0xf]  ;;  %v1949_v41 = vld [vmem:[#allocation9 + $0x58] sm:$0xff] }
  0xb1   :  { %v2204_v3 = vpack.c.bf16 %v221_v59, %v217_v52  ;;  %883 = vmatmul.bf16.vlgmr.msra.gmra.mxu0 %v2202_v63  ;;  %v1580_v52 = vld [vmem:[#allocation8 + $0x1b8] sm:$0xf]  ;;  %v1389_v59 = vor.u32 %v1850_v51, %v1388_v49  ;;  %v1725_v62 = vor.u32 %v1934_v56, %v1724_v55  ;;  %v1959_v51 = vld [vmem:[#allocation9 + $0xa8] sm:$0xff] }
  0xb2   :  { %v210_v7 = vpop.f32.mrf.mxu3  ;;  %987 = vmatpush.bf16.msra.mxu0 %v1449_v60  ;;  %v1581_v60 = vor.u32 %v1898_v53, %v1580_v52  ;;  %v1961_v42 = vld [vmem:[#allocation9 + $0xb8] sm:$0xff]  ;;  %v1946_v53 = vld [vmem:[#allocation9 + $0x40] sm:$0xff] }
  0xb3   :  { %1002 = vmatpush.bf16.msrb.mxu1 %v1533_v58  ;;  %911 = vmatmul.bf16.vlgmr.msrb.gmra.mxu2 %v2204_v3  ;;  %v211_v28 = vadd.f32 %v210_v7, %v110_v16  ;;  %v1868_v58 = vld [vmem:[#allocation8 + $0xd0] sm:$0xf0] }
  0xb4   :  { %1015 = vmatpush.bf16.msrb.mxu2 %v1641_v0  ;;  %v1847_v0 = vld [vmem:[#allocation8 + $0x28] sm:$0xf0]  ;;  %v1461_v4 = vor.u32 %v1868_v58, %v1460_v57 }
  0xb5   :  { %v218_v39 = vmax.f32 %v211_v28, 0.0  ;;  %v1377_v7 = vor.u32 %v1847_v0, %v1376_v61  ;;  %v1919_v28 = vld [vmem:[#allocation8 + $0x268] sm:$0xf0]  ;;  %v1956_v0 = vld [vmem:[#allocation9 + $0x90] sm:$0xff] }
  0xb6   :  { %988 = vmatpush.bf16.msra.mxu0 %v1437_v8  ;;  %v1569_v8 = vor.u32 %v1895_v2, %v1568_v1 }
  0xb7   :  { %1003 = vmatpush.bf16.msrb.mxu1 %v1521_v6  ;;  %v1931_v6 = vld [vmem:[#allocation8 + $0x2c8] sm:$0xf0] }
  0xb8   :  { %1016 = vmatpush.bf16.msrb.mxu2 %v1629_v11  ;;  %v1713_v10 = vor.u32 %v1931_v6, %v1712_v5  ;;  %v1844_v11 = vld [vmem:[#allocation8 + $0x10] sm:$0xf0] }
  0xba   :  { %v212_v30 = vpop.f32.mrf.mxu3  ;;  %989 = vmatpush.bf16.msra.mxu0 %v1425_v18  ;;  %v1701_v18 = vor.u32 %v1928_v15, %v1700_v14  ;;  %v1954_v15 = vld [vmem:[#allocation9 + $0x80] sm:$0xff] }
  0xbb   :  { %1004 = vmatpush.bf16.msrb.mxu1 %v1509_v17  ;;  %v213_v33 = vadd.f32 %v212_v30, %v110_v16  ;;  %v1365_v16 = vor.u32 %v1844_v11, %v1364_v9  ;;  %v1557_v17 = vor.u32 %v1892_v13, %v1556_v12  ;;  %v1916_v30 = vld [vmem:[#allocation8 + $0x250] sm:$0xf0]  ;;  %v1955_v9 = vld [vmem:[#allocation9 + $0x88] sm:$0xff] }
  0xbc   :  { %1017 = vmatpush.bf16.msrb.mxu2 %v1617_v21  ;;  %v1689_v21 = vor.u32 %v1925_v20, %v1688_v19 }
  0xbd   :  { %v222_v40 = vmax.f32 %v213_v33, 0.0  ;;  %v1941_v33 = vld [vmem:[#allocation9 + $0x18] sm:$0xff] }
  0xbe   :  { %953 = vmatmul.bf16.vlgmr.msra.gmra.mxu1 %v2199_v44  ;;  %990 = vmatpush.bf16.msra.mxu0 %v1413_v31 }
  0xbf   :  { %1005 = vmatpush.bf16.msrb.mxu1 %v1497_v29  ;;  %v2210_v46 = vpack.c.bf16 %v222_v40, %v218_v39  ;;  %v1652_v29 = vld [vmem:[#allocation8 + $0x248] sm:$0xf]  ;;  %v1938_v39 = vld [vmem:[#allocation9] sm:$0xff] }
  0xc0   :  { %1018 = vmatpush.bf16.msrb.mxu2 %v1605_v34  ;;  %v1653_v31 = vor.u32 %v1916_v30, %v1652_v29  ;;  %v1953_v34 = vld [vmem:[#allocation9 + $0x78] sm:$0xff]  ;;  %v1950_v40 = vld [vmem:[#allocation9 + $0x60] sm:$0xff] }
  0xc1   :  { %925 = vmatmul.bf16.vlgmr.msra.gmra.mxu3 %v2210_v46  ;;  %939 = vmatmul.bf16.vlgmr.msrb.gmra.mxu0 %v2202_v63 }
  0xc2   :  { %991 = vmatpush.bf16.msra.mxu0 %v1401_v47  ;;  %1029 = vmatpush.bf16.msra.mxu3 %v1737_v50  ;;  %v1960_v47 = vld [vmem:[#allocation9 + $0xb0] sm:$0xff]  ;;  %v1947_v50 = vld [vmem:[#allocation9 + $0x48] sm:$0xff] }
  0xc3   :  { %1006 = vmatpush.bf16.msrb.mxu1 %v1485_v24  ;;  %967 = vmatmul.bf16.vlgmr.msra.gmra.mxu2 %v2204_v3 }
  0xc4   :  { %1019 = vmatpush.bf16.msrb.mxu2 %v1593_v48  ;;  %v2223_v48 = vld [vmem:[%s2242_s5] sm:$0x7] }
  0xc5   :  { %v357_v52 = vperm.slane %v2223_v48, 0  ;;  %v358_v11 = vperm.slane %v2223_v48, 1 }
  0xc6   :  { %992 = vmatpush.bf16.msra.mxu0 %v1389_v59  ;;  %1030 = vmatpush.bf16.msra.mxu3 %v1725_v62  ;;  %v1957_v59 = vld [vmem:[#allocation9 + $0x98] sm:$0xff] }
  0xc7   :  { %1007 = vmatpush.bf16.msrb.mxu1 %v1473_v54  ;;  %v1958_v54 = vld [vmem:[#allocation9 + $0xa0] sm:$0xff] }
  0xc8   :  { %1020 = vmatpush.bf16.msrb.mxu2 %v1581_v60 }
  0xca   :  { %993 = vmatpush.bf16.msra.mxu0 %v1377_v7  ;;  %1031 = vmatpush.bf16.msra.mxu3 %v1713_v10 }
  0xcb   :  { %1008 = vmatpush.bf16.msrb.mxu1 %v1461_v4 }
  0xcc   :  { %1021 = vmatpush.bf16.msrb.mxu2 %v1569_v8 }
  0xce   :  { %1009 = vmatmul.bf16.vlgmr.msrb.gmra.mxu1 %v2199_v44  ;;  %994 = vmatpush.bf16.msra.mxu0 %v1365_v16  ;;  %v1665_v44 = vor.u32 %v1919_v28, %v1664_v27 }
  0xcf   :  { %1032 = vmatpush.bf16.msra.mxu3 %v1701_v18  ;;  %1262 = vmatpush.bf16.msra.mxu1 %v1953_v34 }
  0xd0   :  { %1022 = vmatpush.bf16.msrb.mxu2 %v1557_v17 }
  0xd1   :  { %981 = vmatmul.bf16.vlgmr.msrb.gmra.mxu3 %v2210_v46  ;;  %995 = vmatmul.bf16.vlgmr.msra.gmra.mxu0 %v2202_v63  ;;  %v1943_v63 = vld [vmem:[#allocation9 + $0x28] sm:$0xff] }
  0xd2   :  { %1248 = vmatpush.bf16.msrb.mxu0 %v1945_v32 }
  0xd3   :  { %1023 = vmatmul.bf16.vlgmr.msrb.gmra.mxu2 %v2204_v3  ;;  %1033 = vmatpush.bf16.msra.mxu3 %v1689_v21  ;;  %v1942_v3 = vld [vmem:[#allocation9 + $0x20] sm:$0xff] }
  0xd4   :  { %1263 = vmatpush.bf16.msra.mxu1 %v1952_v36  ;;  %1276 = vmatpush.bf16.msra.mxu2 %v1961_v42 }
  0xd6   :  { %1249 = vmatpush.bf16.msrb.mxu0 %v1944_v25 }
  0xd7   :  { %1034 = vmatpush.bf16.msra.mxu3 %v1677_v26 }
  0xd8   :  { %1264 = vmatpush.bf16.msra.mxu1 %v1951_v38  ;;  %1277 = vmatpush.bf16.msra.mxu2 %v1960_v47 }
  0xda   :  { %1250 = vmatpush.bf16.msrb.mxu0 %v1943_v63 }
  0xdb   :  { %1035 = vmatpush.bf16.msra.mxu3 %v1665_v44 }
  0xdc   :  { %1265 = vmatpush.bf16.msra.mxu1 %v1950_v40  ;;  %1278 = vmatpush.bf16.msra.mxu2 %v1959_v51  ;;  %v1975_v51 = vld [vmem:[%s2244_s7] ss:$0 sm:$0xff] }
  0xde   :  { %1251 = vmatpush.bf16.msrb.mxu0 %v1942_v3  ;;  %v359_v3 = vperm.slane %v2223_v48, 2 }
  0xdf   :  { %1036 = vmatpush.bf16.msra.mxu3 %v1653_v31 }
  0xe0   :  { %1266 = vmatpush.bf16.msra.mxu1 %v1949_v41  ;;  %1279 = vmatpush.bf16.msra.mxu2 %v1958_v54 }
  0xe2   :  { %1037 = vmatmul.bf16.vlgmr.msra.gmra.mxu3 %v2210_v46  ;;  %1252 = vmatpush.bf16.msrb.mxu0 %v1941_v33  ;;  %v1948_v46 = vld [vmem:[#allocation9 + $0x50] sm:$0xff] }
  0xe4   :  { %1267 = vmatpush.bf16.msra.mxu1 %v1948_v46  ;;  %1280 = vmatpush.bf16.msra.mxu2 %v1957_v59 }
  0xe6   :  { %1253 = vmatpush.bf16.msrb.mxu0 %v1940_v35 }
  0xe8   :  { %1268 = vmatpush.bf16.msra.mxu1 %v1947_v50  ;;  %1281 = vmatpush.bf16.msra.mxu2 %v1956_v0 }
  0xea   :  { %1254 = vmatpush.bf16.msrb.mxu0 %v1939_v37 }
  0xec   :  { %1269 = vmatpush.bf16.msra.mxu1 %v1946_v53  ;;  %1282 = vmatpush.bf16.msra.mxu2 %v1955_v9 }
  0xee   :  { %1255 = vmatpush.bf16.msrb.mxu0 %v1938_v39 }
  0xf0   :  { %1283 = vmatpush.bf16.msra.mxu2 %v1954_v15 }
 0x12b   :  { %v898_v43 = vpop.f32.mrf.mxu1 }
 0x12e   :  { %v884_v24 = vpop.f32.mrf.mxu0 }
 0x12f   :  { %v885_v57 = vadd.f32 %v884_v24, %v357_v52 }
 0x131   :  { %v899_v62 = vadd.f32 %v898_v43, %v885_v57 }
 0x133   :  { %v900_v55 = vpop.f32.mrf.mxu1 }
 0x136   :  { %v912_v45 = vpop.f32.mrf.mxu2  ;;  %v886_v49 = vpop.f32.mrf.mxu0 }
 0x137   :  { %v887_v60 = vadd.f32 %v886_v49, %v357_v52  ;;  %v913_v1 = vadd.f32 %v912_v45, %v899_v62 }
 0x139   :  { %v901_v2 = vadd.f32 %v900_v55, %v887_v60 }
 0x13b   :  { %v954_v4 = vpop.f32.mrf.mxu1 }
 0x13e   :  { %v914_v56 = vpop.f32.mrf.mxu2  ;;  %v940_v61 = vpop.f32.mrf.mxu0 }
 0x13f   :  { %v915_v5 = vadd.f32 %v914_v56, %v901_v2  ;;  %v941_v17 = vadd.f32 %v940_v61, %v358_v11  ;;  %v1292_v61 = vstv %s2237_s0 }
 0x141   :  { %v955_v22 = vadd.f32 %v954_v4, %v941_v17 }
 0x143   :  { %v956_v20 = vpop.f32.mrf.mxu1 }
 0x144   :  { %v926_v58 = vpop.f32.mrf.mxu3 }
 0x145   :  { %v927_v6 = vadd.f32 %v926_v58, %v913_v1 }
 0x146   :  { %v968_v7 = vpop.f32.mrf.mxu2  ;;  %v942_v14 = vpop.f32.mrf.mxu0 }
 0x147   :  { %v1043_v12 = vmax.f32 %v927_v6, 0.0  ;;  %v943_v19 = vadd.f32 %v942_v14, %v358_v11  ;;  %v969_v23 = vadd.f32 %v968_v7, %v955_v22 }
 0x149   :  { %v957_v26 = vadd.f32 %v956_v20, %v943_v19 }
 0x14b   :  { %v1010_v25 = vpop.f32.mrf.mxu1 }
 0x14c   :  { %v928_v8 = vpop.f32.mrf.mxu3 }
 0x14d   :  { %v929_v10 = vadd.f32 %v928_v8, %v915_v5 }
 0x14e   :  { %v970_v21 = vpop.f32.mrf.mxu2  ;;  %v996_v27 = vpop.f32.mrf.mxu0 }
 0x14f   :  { %v1046_v13 = vmax.f32 %v929_v10, 0.0  ;;  %v971_v28 = vadd.f32 %v970_v21, %v957_v26  ;;  %v997_v35 = vadd.f32 %v996_v27, %v359_v3 }
 0x151   :  { %v1049_v16 = vpack.c.bf16 %v1046_v13, %v1043_v12  ;;  %v1011_v38 = vadd.f32 %v1010_v25, %v997_v35 }
 0x153   :  { %1256 = vmatmul.bf16.vlgmr.msrb.gmra.mxu0 %v1049_v16  ;;  %v1012_v39 = vpop.f32.mrf.mxu1 }
 0x154   :  { %v982_v18 = vpop.f32.mrf.mxu3 }
 0x155   :  { %v983_v44 = vadd.f32 %v982_v18, %v969_v23 }
 0x156   :  { %v1024_v63 = vpop.f32.mrf.mxu2  ;;  %v998_v34 = vpop.f32.mrf.mxu0 }
 0x157   :  { %v1044_v31 = vmax.f32 %v983_v44, 0.0  ;;  %v999_v37 = vadd.f32 %v998_v34, %v359_v3  ;;  %v1025_v24 = vadd.f32 %v1024_v63, %v1011_v38 }
 0x159   :  { %v1013_v41 = vadd.f32 %v1012_v39, %v999_v37 }
 0x15c   :  { %v984_v29 = vpop.f32.mrf.mxu3 }
 0x15d   :  { %v985_v30 = vadd.f32 %v984_v29, %v971_v28 }
 0x15e   :  { %v1026_v40 = vpop.f32.mrf.mxu2 }
 0x15f   :  { %v1047_v32 = vmax.f32 %v985_v30, 0.0  ;;  %v1027_v42 = vadd.f32 %v1026_v40, %v1013_v41 }
 0x161   :  { %v1050_v33 = vpack.c.bf16 %v1047_v32, %v1044_v31 }
 0x163   :  { %1270 = vmatmul.bf16.vlgmr.msra.gmra.mxu1 %v1050_v33 }
 0x165   :  { %v1038_v36 = vpop.f32.mrf.mxu3 }
 0x166   :  { %v1039_v43 = vadd.f32 %v1038_v36, %v1025_v24 }
 0x168   :  { %v1045_v47 = vmax.f32 %v1039_v43, 0.0 }
 0x16d   :  { %v1040_v45 = vpop.f32.mrf.mxu3 }
 0x16e   :  { %v1041_v46 = vadd.f32 %v1040_v45, %v1027_v42 }
 0x170   :  { %v1048_v49 = vmax.f32 %v1041_v46, 0.0 }
 0x172   :  { %v1051_v50 = vpack.c.bf16 %v1048_v49, %v1045_v47 }
 0x174   :  { %1284 = vmatmul.bf16.vlgmr.msra.gmra.mxu2 %v1051_v50 }
 0x1d0   :  { %v1257_v48 = vpop.f32.mrf.mxu0 }
 0x1d1   :  { %v1258_v53 = vadd.f32 %v1975_v51, %v1257_v48 }
 0x1d8   :  { %v1259_v57 = vpop.f32.mrf.mxu0 }
 0x1d9   :  { %v1260_v59 = vadd.f32 %v1975_v51, %v1259_v57 }
 0x1e0   :  { %v1271_v52 = vpop.f32.mrf.mxu1 }
 0x1e1   :  { %v1272_v54 = vadd.f32 %v1271_v52, %v1258_v53 }
 0x1e8   :  { %v1273_v58 = vpop.f32.mrf.mxu1 }
 0x1e9   :  { %v1274_v60 = vadd.f32 %v1273_v58, %v1260_v59 }
 0x1f7   :  { %v1285_v55 = vpop.f32.mrf.mxu2 }
 0x1f8   :  { %v1286_v56 = vadd.f32 %v1285_v55, %v1272_v54 }
 0x1fa   :  { %1976 = vtanh.f32 %v1286_v56 }
 0x1ff   :  { %v1287_v62 = vpop.f32.mrf.mxu2 }
 0x200   :  { %v1977_v0 = vpop.eup %1976  ;;  %v1288_v1 = vadd.f32 %v1287_v62, %v1274_v60 }
 0x201   :  { %v1293_v2 = vmul.f32 %v1977_v0, %v1292_v61 }
 0x202   :  { %1978 = vtanh.f32 %v1288_v1 }
 0x203   :  { %1295 = vst [vmem:[#allocation11] sm:$0xff] %v1293_v2 }
 0x208   :  { %v1979_v4 = vpop.eup %1978 }
 0x209   :  { %v1294_v5 = vmul.f32 %v1979_v4, %v1292_v61 }
 0x20b   :  { %1296 = vst [vmem:[#allocation11 + $0x8] sm:$0xff] %v1294_v5 }
 0x20c   :  { %1300 = vsyncadd [#allocation5], 224  ;;  %s1303_s14 = sshll.u32 %s2245_s8, 4  ;;  %s2118_s15 = smov [#allocation11]   ;;  %s1304_s14 = int_to_ptr.hbm [resolvable:$true] %s1303_s14 }
 0x20d   :  { %s1301_s16 = sshll.u32 %s2118_s15, 4  ;;  %s2119_s17 = smov 32   ;;  %s1302_s16 = int_to_ptr.vmem [resolvable:$true] %s1301_s16 }
 0x20e   :  { %s2120_s0 = smov 2  }
 0x20f   :  { %1309 = dma.vmem_to_hbm [thread:$0]  %s1302_s16, 32, %s1304_s14, [#allocation5], %s2119_s17, %s2119_s17, %s2120_s0  }
 0x210   :  { %2106 = dma.done.wait [#allocation5], 256  }
 0x211   :  { %2107 = vsyncadd [#allocation5], 4294967040 }
 0x212   :  { %1314 = vsyncpa [#allocation4], 1 }
 0x213   :  { %1315 = vsyncpa [#allocation7], 1 }
 0x214   :  { %1316 = vsyncpa [#allocation10], 1 }
 0x215   :  { %1317 = vsyncpa [#allocation5], 1 }

</bundles_post_ra>
